<compile_context>
chip_gen: v7x
topology: tpu7x:2x2x1
jax: 0.10.0
libtpu: 0.0.40
codegen_flags: <defaults>
</compile_context>

<pallas_src>
import functools

import numpy as np
import jax
import jax.numpy as jnp
from jax.experimental import pallas as pl
from jax.experimental.pallas import tpu as pltpu

TEMPERATURE = 0.07        # SupConLoss() defaults used by Joint2NonJointLoss
BASE_TEMPERATURE = 0.07


def _default_row_tile():
    # v6e: 256-wide MXU + 128 MiB VMEM -> TM=256 fills the systolic array.
    # v5e (128-wide MXU) and v7x (64 MiB VMEM): keep TM=128.
    try:
        kind = jax.devices()[0].device_kind.lower()
        if "v6" in kind:
            return 256
    except Exception:
        pass
    return 128


ROW_TILE = _default_row_tile()


def _supcon_lse_kernel(zc_ref, bias_ref, w_ref, o_ref, *, row_tile):
    """Per anchor-row-block:  sum_i w_i * maskedLSE_i(logits)."""
    i = pl.program_id(0)
    start = pl.multiple_of(i * row_tile, row_tile)

    zc = zc_ref[...]                               # [M, D] bf16, resident contrast
    za = zc_ref[pl.ds(start, row_tile), :]         # [TM, D] anchor slice (no extra DMA)

    # s_ij = z_i . z_j / T  (sqrt(1/T) pre-folded into both bf16 factors);
    # bf16 x bf16 on the MXU with f32 accumulation.
    s = jax.lax.dot_general(za, zc, (((1,), (1,)), ((), ())),
                            preferred_element_type=jnp.float32)   # [TM, M] f32

    tm, m = s.shape
    neg_big = jnp.float32(-1e30)
    rows = start + jax.lax.broadcasted_iota(jnp.int32, (tm, 1), 0)  # [TM, 1]
    cols = jax.lax.broadcasted_iota(jnp.int32, (tm, m), 1)          # [TM, M]

    # Single additive bias masks invalid/padded columns; one select masks the
    # self-similarity diagonal.
    s_m = s + bias_ref[...]                        # bias: 0 valid / -1e30 invalid
    s_m = jnp.where(cols == rows, neg_big, s_m)

    # Masked log-sum-exp over the contrast axis.  Masked entries underflow to
    # exactly 0, and the max entry always contributes exp(0)=1, so denom >= 1
    # and no clamps / extra selects are needed (fully-masked rows stay finite
    # and are zeroed by w).
    row_max = jnp.max(s_m, axis=1, keepdims=True)                   # [TM, 1]
    denom = jnp.sum(jnp.exp(s_m - row_max), axis=1, keepdims=True)  # [TM, 1]
    log_denom = row_max + jnp.log(denom)                            # [TM, 1]

    # Positive-pair term handled algebraically in the wrapper (class-sum
    # trick); the kernel only emits  sum_i w_i * log_denom_i  per row block.
    o_ref[0, 0] = jnp.sum(w_ref[...] * log_denom)


def _masked_lse_rowsum(z_bf16, col_bias, w_col, *, row_tile):
    """Returns sum_i w_i * log(sum_{j valid, j!=i} exp(z_i.z_j / T))."""
    m_pad, d = z_bf16.shape
    g = m_pad // row_tile

    kernel = functools.partial(_supcon_lse_kernel, row_tile=row_tile)

    cost = pl.CostEstimate(
        flops=2 * m_pad * m_pad * d + 6 * m_pad * m_pad,
        transcendentals=m_pad * m_pad + m_pad,
        bytes_accessed=2 * m_pad * d + 8 * m_pad + 4 * g)

    # VMEM plan: bf16 contrast (single-buffered) + f32 column bias + a handful
    # of live [TM, M] f32 temporaries; capped at 64 MiB so the same plan also
    # fits v7x's smaller VMEM.
    tile_f32 = 4 * row_tile * m_pad
    vmem_est = 2 * m_pad * d + 4 * m_pad + 8 * 4 * row_tile + 6 * tile_f32
    vmem_limit = int(min(64 << 20, max(32 << 20, 2 * vmem_est)))

    partials = pl.pallas_call(
        kernel,
        grid=(g,),
        out_shape=jax.ShapeDtypeStruct((g, 1), jnp.float32),
        in_specs=[
            # Whole contrast block, grid-invariant -> single-buffered.
            pl.BlockSpec((m_pad, d), lambda i: (0, 0),
                         pipeline_mode=pl.Buffered(1)),
            # Column-validity bias, grid-invariant -> single-buffered.
            pl.BlockSpec((1, m_pad), lambda i: (0, 0),
                         pipeline_mode=pl.Buffered(1)),
            # Per-anchor-row weights (valid & has-positives).
            pl.BlockSpec((row_tile, 1), lambda i: (i, 0)),
        ],
        out_specs=pl.BlockSpec((1, 1), lambda i: (i, 0),
                               memory_space=pltpu.MemorySpace.SMEM),
        compiler_params=pltpu.CompilerParams(
            dimension_semantics=("parallel",),
            vmem_limit_bytes=vmem_limit),
        cost_estimate=cost,
    )(z_bf16, col_bias, w_col)
    return jnp.sum(partials)


@jax.jit
def joint2nonjoint_loss(output, target):
    """output: [B, J, V, D] float, target: [B, J] int.  Returns scalar loss."""
    B, J, V, D = output.shape
    feats = output.reshape(B * J, V, D).astype(jnp.float32)
    tgt = target.reshape(B * J)

    # Fixed-capacity replacement of `output[target != 0]`: keep every row and
    # mask invalid ones instead of changing shapes (whole forward stays
    # jittable; masked rows/cols are excluded via bias / weights).
    valid = tgt != 0
    lbl1 = tgt == 1

    # view-major concat == torch.cat(torch.unbind(features, dim=1), dim=0)
    contrast = jnp.transpose(feats, (1, 0, 2)).reshape(V * B * J, D)
    m = V * B * J
    valid_m = jnp.tile(valid, V)
    lbl_m = jnp.tile(lbl1, V)

    # Fused key: 0 = dropped (target==0), 1 = label 0, 2 = label 1.
    key = jnp.where(valid_m, jnp.where(lbl_m, 2, 1), 0).astype(jnp.int32)
    valid_f = (key > 0).astype(jnp.float32)

    # ---- positive-pair term, exact in f32 via the 2-class class-sum trick:
    #   sum_{j in pos(i)} z_i.z_j / T = (z_i . classSum[label_i] - |z_i|^2)/T
    #   pos_cnt_i = (#valid rows with label_i) - 1
    is_c1 = (key == 1)[:, None].astype(jnp.float32)
    is_c2 = (key == 2)[:, None].astype(jnp.float32)
    cls_sum1 = jnp.sum(contrast * is_c1, axis=0)            # [D]
    cls_sum2 = jnp.sum(contrast * is_c2, axis=0)            # [D]
    cnt1 = jnp.sum(is_c1)
    cnt2 = jnp.sum(is_c2)
    cls_for_row = jnp.where((key == 2)[:, None], cls_sum2[None, :],
                            cls_sum1[None, :])
    pos_sum_s = (jnp.sum(contrast * cls_for_row, axis=1)
                 - jnp.sum(contrast * contrast, axis=1)) / TEMPERATURE
    pos_cnt = jnp.where(key == 2, cnt2, cnt1) - 1.0
    has_pos = (pos_cnt > 0.5).astype(jnp.float32)
    # Rows with zero positives produce loss 0 (torch reference would NaN in
    # that degenerate case) but still count in the final divisor.
    w = valid_f * has_pos
    pos_mean = pos_sum_s / jnp.maximum(pos_cnt, 1.0)
    sum_pos = jnp.sum(w * pos_mean)                         # scalar, exact f32

    # ---- pad M to the row tile and feed the MXU in bf16 ---------------------
    tm = min(ROW_TILE, max(ROW_TILE, 128))
    m_pad = ((m + tm - 1) // tm) * tm
    pad = m_pad - m

    # Fold sqrt(1/T) into both matmul factors: s comes out of the MXU already
    # divided by the temperature (no per-element MxM scale in the kernel).
    inv_sqrt_t = float(1.0 / TEMPERATURE) ** 0.5
    z_bf = (contrast * jnp.float32(inv_sqrt_t)).astype(jnp.bfloat16)
    z_bf = jnp.pad(z_bf, ((0, pad), (0, 0)))                       # [M_pad, D] bf16

    col_bias = jnp.where(jnp.pad(valid_f, (0, pad)) > 0.5,
                         jnp.float32(0.0), jnp.float32(-1e30))
    col_bias = col_bias.reshape(1, m_pad)                          # [1, M_pad] f32
    w_col = jnp.pad(w, (0, pad)).reshape(m_pad, 1).astype(jnp.float32)

    sum_logdenom = _masked_lse_rowsum(z_bf, col_bias, w_col, row_tile=tm)

    # loss.view(anchor_count, batch_size).mean() == mean over all valid rows
    n_rows = jnp.maximum(jnp.sum(valid_f), 1.0)
    scale = TEMPERATURE / BASE_TEMPERATURE
    return scale * (sum_logdenom - sum_pos) / n_rows


def _numpy_reference(output, target, temperature=TEMPERATURE,
                     base_temperature=BASE_TEMPERATURE):
    """Float64 NumPy port of Joint2NonJointLoss (PyTorch semantics)."""
    B, J, V, D = output.shape
    feats = np.asarray(output, np.float64).reshape(B * J, V, D)
    tgt = np.asarray(target).reshape(B * J)
    sel = tgt != 0
    feats, tgt = feats[sel], tgt[sel]
    labels = (tgt == 1).astype(np.float64)
    N = feats.shape[0]
    mask = (labels[:, None] == labels[None, :]).astype(np.float64)
    contrast = np.concatenate([feats[:, v, :] for v in range(V)], axis=0)
    adc = contrast @ contrast.T / temperature
    logits = adc - adc.max(axis=1, keepdims=True)
    mask = np.tile(mask, (V, V))
    logits_mask = 1.0 - np.eye(V * N)
    mask = mask * logits_mask
    exp_logits = np.exp(logits) * logits_mask
    log_prob = logits - np.log(exp_logits.sum(1, keepdims=True))
    mean_log_prob_pos = (mask * log_prob).sum(1) / mask.sum(1)
    loss = -(temperature / base_temperature) * mean_log_prob_pos
    return loss.reshape(V, N).mean()


if __name__ == "__main__":
    key = jax.random.PRNGKey(0)
    k1, k2 = jax.random.split(key)

    B, J, V, D = 2, 8, 2, 32
    output = jax.random.normal(k1, (B, J, V, D), dtype=jnp.float32)
    # Contrastive embeddings are L2-normalized in practice; keeps the
    # temperature-0.07 softmax well conditioned.
    output = output / jnp.linalg.norm(output, axis=-1, keepdims=True)
    target = jax.random.randint(k2, (B, J), 0, 3)            # values in {0,1,2}
    # guarantee both classes are present among valid joints
    target = target.at[0, 0].set(1).at[0, 1].set(2)

    loss = joint2nonjoint_loss(output, target)
    loss = jax.block_until_ready(loss)

    ref = _numpy_reference(np.asarray(output), np.asarray(target))
    # Tolerance reflects the bf16 MXU feed of the denominator logits
    # (the positive-pair term is computed exactly in f32).
    np.testing.assert_allclose(np.asarray(loss), ref, rtol=2e-2, atol=2e-2)

    print("KERNEL_OK")
</pallas_src>

<mosaic_0001>
module attributes {stable_mosaic.version = 11 : i64} {
  func.func @_supcon_lse_kernel(%arg0: i32, %arg1: memref<128x32xbf16, #tpu.memory_space<vmem>>, %arg2: memref<1x128xf32, #tpu.memory_space<vmem>>, %arg3: memref<128x1xf32, #tpu.memory_space<vmem>>, %arg4: memref<1x1xf32, #tpu.memory_space<smem>>) attributes {dimension_semantics = [#tpu.dimension_semantics<parallel>], iteration_bounds = array<i64: 1>, scalar_prefetch = 0 : i64, scratch_operands = 0 : i64, tpu.core_type = #tpu.core_type<tc>, window_params = [{pipeline_mode = #tpu.pipeline_mode<synchronous>, transform_indices = @transform_0, window_bounds = array<i64: 128, 32>}, {pipeline_mode = #tpu.pipeline_mode<synchronous>, transform_indices = @transform_1, window_bounds = array<i64: 1, 128>}, {transform_indices = @transform_2, window_bounds = array<i64: 128, 1>}, {transform_indices = @transform_3, window_bounds = array<i64: 1, 1>}]} {
    %c128_i32 = arith.constant 128 : i32
    %0 = arith.muli %arg0, %c128_i32 : i32
    %1 = tpu.assume_multiple %0, 128 : i32
    %c0 = arith.constant 0 : index
    %c0_0 = arith.constant 0 : index
    %2 = vector.load %arg1[%c0, %c0_0] : memref<128x32xbf16, #tpu.memory_space<vmem>>, vector<128x32xbf16>
    %3 = arith.index_cast %1 : i32 to index
    %c0_1 = arith.constant 0 : index
    %4 = vector.load %arg1[%3, %c0_1] : memref<128x32xbf16, #tpu.memory_space<vmem>>, vector<128x32xbf16>
    %cst = arith.constant dense<0.000000e+00> : vector<128x128xf32>
    %5 = tpu.matmul %4, %2, %cst {dimension_numbers = #tpu.dot_dimension_numbers<[1], [1], [0], [0], [0, 0, 1, 0], [], []>} : vector<128x32xbf16>, vector<128x32xbf16>, vector<128x128xf32> -> vector<128x128xf32>
    %6 = tpu.iota {dimensions = array<i32: 0>} : vector<128x1xi32>
    %7 = vector.broadcast %1 : i32 to vector<128x1xi32>
    %8 = arith.addi %7, %6 : vector<128x1xi32>
    %9 = tpu.iota {dimensions = array<i32: 1>} : vector<128x128xi32>
    %c0_2 = arith.constant 0 : index
    %c0_3 = arith.constant 0 : index
    %10 = vector.load %arg2[%c0_2, %c0_3] : memref<1x128xf32, #tpu.memory_space<vmem>>, vector<1x128xf32>
    %11 = vector.broadcast %10 : vector<1x128xf32> to vector<128x128xf32>
    %12 = arith.addf %5, %11 : vector<128x128xf32>
    %13 = vector.broadcast %8 : vector<128x1xi32> to vector<128x128xi32>
    %14 = arith.cmpi eq, %9, %13 : vector<128x128xi32>
    %cst_4 = arith.constant -1.000000e+30 : f32
    %15 = vector.broadcast %cst_4 : f32 to vector<128x128xf32>
    %16 = arith.select %14, %15, %12 : vector<128x128xi1>, vector<128x128xf32>
    %cst_5 = arith.constant dense<0xFF800000> : vector<128xf32>
    %17 = vector.multi_reduction <maximumf>, %16, %cst_5 [1] : vector<128x128xf32> to vector<128xf32>
    %18 = vector.shape_cast %17 : vector<128xf32> to vector<128x1xf32>
    %19 = vector.broadcast %18 : vector<128x1xf32> to vector<128x128xf32>
    %20 = arith.subf %16, %19 : vector<128x128xf32>
    %21 = math.exp %20 : vector<128x128xf32>
    %cst_6 = arith.constant dense<0.000000e+00> : vector<128xf32>
    %22 = vector.multi_reduction <add>, %21, %cst_6 [1] : vector<128x128xf32> to vector<128xf32>
    %23 = vector.shape_cast %22 : vector<128xf32> to vector<128x1xf32>
    %24 = math.log %23 : vector<128x1xf32>
    %25 = arith.addf %18, %24 : vector<128x1xf32>
    %c0_7 = arith.constant 0 : index
    %c0_8 = arith.constant 0 : index
    %26 = vector.load %arg3[%c0_7, %c0_8] : memref<128x1xf32, #tpu.memory_space<vmem>>, vector<128x1xf32>
    %27 = arith.mulf %26, %25 : vector<128x1xf32>
    %28 = vector.shape_cast %27 : vector<128x1xf32> to vector<1x128x1xf32>
    %cst_9 = arith.constant dense<0.000000e+00> : vector<1xf32>
    %29 = vector.multi_reduction <add>, %28, %cst_9 [1, 2] : vector<1x128x1xf32> to vector<1xf32>
    %30 = vector.shape_cast %29 : vector<1xf32> to vector<1x1x1xf32>
    %31 = vector.extract %30[0, 0, 0] : f32 from vector<1x1x1xf32>
    %c0_10 = arith.constant 0 : index
    %c0_11 = arith.constant 0 : index
    %32 = memref.load %arg4[%c0_10, %c0_11] : memref<1x1xf32, #tpu.memory_space<smem>>
    memref.store %31, %arg4[%c0_10, %c0_11] : memref<1x1xf32, #tpu.memory_space<smem>>
    return
  }
  func.func @transform_0(%arg0: i32) -> (i32, i32) {
    %c0_i32 = arith.constant 0 : i32
    %c0_i32_0 = arith.constant 0 : i32
    %c0_i32_1 = arith.constant 0 : i32
    return %c0_i32, %c0_i32_0 : i32, i32
  }
  func.func @transform_1(%arg0: i32) -> (i32, i32) {
    %c0_i32 = arith.constant 0 : i32
    %c0_i32_0 = arith.constant 0 : i32
    %c0_i32_1 = arith.constant 0 : i32
    return %c0_i32, %c0_i32_0 : i32, i32
  }
  func.func @transform_2(%arg0: i32) -> (i32, i32) {
    %c0_i32 = arith.constant 0 : i32
    %c0_i32_0 = arith.constant 0 : i32
    return %arg0, %c0_i32 : i32, i32
  }
  func.func @transform_3(%arg0: i32) -> (i32, i32) {
    %c0_i32 = arith.constant 0 : i32
    %c0_i32_0 = arith.constant 0 : i32
    return %arg0, %c0_i32 : i32, i32
  }
}

</mosaic_0001>

<bundles_post_ra>
// kernel: joint2nonjoint_loss.1
= control target key start
LH: loop header
LB: loop body
LE: loop exit
PB: predicated region body
PF: predicated region fallthrough
CT: control target
= control target key end

     0   :  { %vm176_vm0 = vcmask 261120   ;;  %s1166_s0 = inlined_call_operand.vmem [shape: bf16[128,32], index: 0, kind: input, shape index: {}]   ;;  %s1167_s1 = inlined_call_operand.vmem [shape: f32[1,128], index: 1, kind: input, shape index: {}]   ;;  %s1168_s2 = inlined_call_operand.vmem [shape: f32[128,1], index: 2, kind: input, shape index: {}]   ;;  %s1169_s3 = inlined_call_operand.hbm [shape: f32[1,1], index: 3, kind: output, shape index: {}]  }
   0x1   :  { %v712_v0 = vld [vmem:[%s1166_s0] sm:$0xff]   ;;  %v713_v1 = vld [vmem:[%s1166_s0 + $0x8] sm:$0xff]   ;;  %v714_v3 = vld [vmem:[%s1166_s0 + $0x10] sm:$0xff]  }
   0x2   :  { %693 = vmatprep.subr.msk.bf16.mxu0 %vm176_vm0, %v712_v0  ;;  %v202_v2 = vsel %vm176_vm0, %v712_v0, 0  ;;  %694 = vmatprep.subr.msk.bf16.mxu1 %vm176_vm0, %v712_v0  ;;  %v205_v4 = vsel %vm176_vm0, %v713_v1, 0  ;;  %v720_v5 = vld [vmem:[%s1166_s0] sm:$0xff]   ;;  %v208_v7 = vsel %vm176_vm0, %v714_v3, 0  ;;  %v715_v8 = vld [vmem:[%s1166_s0 + $0x18] sm:$0xff]  }
   0x3   :  { %646 = vmatpush3.bf16.xpose.msra.mxu0 %v202_v2  ;;  %685 = vmatpush3.bf16.xpose.msra.mxu1 %v202_v2  ;;  %v724_v6 = vld [vmem:[%s1166_s0 + $0x20] sm:$0xff]  }
   0x4   :  { %695 = vmatprep.subr.msk.bf16.mxu0 %vm176_vm0, %v713_v1  ;;  %696 = vmatprep.subr.msk.bf16.mxu1 %vm176_vm0, %v713_v1 }
   0x5   :  { %661 = vmatprep.mubr.msk.bf16.mxu0 %vm176_vm0, %v720_v5  ;;  %669 = vmatprep.mubr.msk.bf16.mxu1 %vm176_vm0, %v724_v6 }
   0xb   :  { %648 = vmatpush3.bf16.xpose.msra.mxu0 %v205_v4  ;;  %686 = vmatpush3.bf16.xpose.msra.mxu1 %v205_v4 }
   0xc   :  { %697 = vmatprep.subr.msk.bf16.mxu0 %vm176_vm0, %v714_v3  ;;  %698 = vmatprep.subr.msk.bf16.mxu1 %vm176_vm0, %v714_v3 }
   0xd   :  { %8 = vsyncpa [#allocation3], 0  ;;  %v211_v9 = vsel %vm176_vm0, %v715_v8, 0  ;;  %v716_v10 = vld [vmem:[%s1166_s0 + $0x20] sm:$0xff]   ;;  %v717_v12 = vld [vmem:[%s1166_s0 + $0x28] sm:$0xff]   ;;  %v53_v24 = vlaneseq  ;;  %s792_s22 = scalar_lea.hbm %s1169_s3, 16 }
   0xe   :  { %v214_v11 = vsel %vm176_vm0, %v716_v10, 0  ;;  %v217_v13 = vsel %vm176_vm0, %v717_v12, 0  ;;  %v718_v14 = vld [vmem:[%s1166_s0 + $0x30] sm:$0xff]   ;;  %v719_v16 = vld [vmem:[%s1166_s0 + $0x38] sm:$0xff]   ;;  %v721_v18 = vld [vmem:[%s1166_s0 + $0x8] sm:$0xff]   ;;  %p793_p0 = scmp.ne.s32.totalorder %s1169_s3, %s792_s22  ;;  %p796_p1 = scmp.lt.u32.totalorder %s792_s22, %s1169_s3 }
   0xf   :  { %v220_v15 = vsel %vm176_vm0, %v718_v14, 0  ;;  %v223_v17 = vsel %vm176_vm0, %v719_v16, 0  ;;  %v725_v19 = vld [vmem:[%s1166_s0 + $0x28] sm:$0xff]   ;;  %v722_v20 = vld [vmem:[%s1166_s0 + $0x10] sm:$0xff]   ;;  %v723_v22 = vld [vmem:[%s1166_s0 + $0x18] sm:$0xff]   ;;  %v905_v25 = vshrl.u32 %v53_v24, 7 }
  0x10   :  { %v726_v21 = vld [vmem:[%s1166_s0 + $0x30] sm:$0xff]   ;;  %v727_v23 = vld [vmem:[%s1166_s0 + $0x38] sm:$0xff]   ;;  %v908_v27 = vand.u32 127, %v53_v24  ;;  %v913_v28 = vld [vmem:[%s1167_s1] ss:$0 sm:$0xff]  ;;  %p798_p2 = pnand %p796_p1, %p793_p0 }
  0x11   :  { %v56_v26 = vadd.s32 16, %v905_v25  ;;  %v57_v30 = vadd.s32 24, %v905_v25  ;;  %v55_v34 = vadd.s32 8, %v905_v25  ;;  %v58_v45 = vadd.s32 32, %v905_v25 }
  0x12   :  { %vm322_vm2 = vcmp.eq.s32.totalorder %v908_v27, %v905_v25  ;;  %v59_v47 = vadd.s32 40, %v905_v25  ;;  %v60_v52 = vadd.s32 48, %v905_v25  ;;  %v61_v58 = vadd.s32 56, %v905_v25 }
  0x13   :  { %650 = vmatpush3.bf16.xpose.msra.mxu0 %v208_v7  ;;  %687 = vmatpush3.bf16.xpose.msra.mxu1 %v208_v7  ;;  %vm324_vm1 = vcmp.eq.s32.totalorder %v908_v27, %v56_v26  ;;  %vm325_vm3 = vcmp.eq.s32.totalorder %v908_v27, %v57_v30  ;;  %vm323_vm4 = vcmp.eq.s32.totalorder %v908_v27, %v55_v34  ;;  %v62_v59 = vadd.s32 64, %v905_v25 }
  0x14   :  { %699 = vmatprep.subr.msk.bf16.mxu0 %vm176_vm0, %v715_v8  ;;  %700 = vmatprep.subr.msk.bf16.mxu1 %vm176_vm0, %v715_v8  ;;  %vm326_vm5 = vcmp.eq.s32.totalorder %v908_v27, %v58_v45  ;;  %vm327_vm6 = vcmp.eq.s32.totalorder %v908_v27, %v59_v47  ;;  %vm328_vm7 = vcmp.eq.s32.totalorder %v908_v27, %v60_v52  ;;  %v63_v0 = vadd.s32 72, %v905_v25 }
  0x15   :  { %vm329_vm8 = vcmp.eq.s32.totalorder %v908_v27, %v61_v58  ;;  %vm330_vm9 = vcmp.eq.s32.totalorder %v908_v27, %v62_v59  ;;  %v64_v6 = vadd.s32 80, %v905_v25 }
  0x16   :  { %vm331_vm10 = vcmp.eq.s32.totalorder %v908_v27, %v63_v0 }
  0x17   :  { %vm332_vm11 = vcmp.eq.s32.totalorder %v908_v27, %v64_v6 }
  0x1b   :  { %652 = vmatpush3.bf16.xpose.msra.mxu0 %v211_v9  ;;  %688 = vmatpush3.bf16.xpose.msra.mxu1 %v211_v9  ;;  %v65_v9 = vadd.s32 88, %v905_v25 }
  0x1c   :  { %701 = vmatprep.subr.msk.bf16.mxu0 %vm176_vm0, %v716_v10  ;;  %702 = vmatprep.subr.msk.bf16.mxu1 %vm176_vm0, %v716_v10  ;;  %v66_v10 = vadd.s32 96, %v905_v25 }
  0x1d   :  { %vm333_vm12 = vcmp.eq.s32.totalorder %v908_v27, %v65_v9 }
  0x1e   :  { %vm334_vm13 = vcmp.eq.s32.totalorder %v908_v27, %v66_v10 }
  0x23   :  { %654 = vmatpush3.bf16.xpose.msra.mxu0 %v214_v11  ;;  %689 = vmatpush3.bf16.xpose.msra.mxu1 %v214_v11 }
  0x24   :  { %703 = vmatprep.subr.msk.bf16.mxu0 %vm176_vm0, %v717_v12  ;;  %704 = vmatprep.subr.msk.bf16.mxu1 %vm176_vm0, %v717_v12 }
  0x2b   :  { %656 = vmatpush3.bf16.xpose.msra.mxu0 %v217_v13  ;;  %690 = vmatpush3.bf16.xpose.msra.mxu1 %v217_v13  ;;  %v67_v13 = vadd.s32 104, %v905_v25 }
  0x2c   :  { %705 = vmatprep.subr.msk.bf16.mxu0 %vm176_vm0, %v718_v14  ;;  %706 = vmatprep.subr.msk.bf16.mxu1 %vm176_vm0, %v718_v14 }
  0x2d   :  { %vm335_vm14 = vcmp.eq.s32.totalorder %v908_v27, %v67_v13 }
  0x33   :  { %658 = vmatpush3.bf16.xpose.msra.mxu0 %v220_v15  ;;  %691 = vmatpush3.bf16.xpose.msra.mxu1 %v220_v15 }
  0x34   :  { %707 = vmatprep.subr.msk.bf16.mxu0 %vm176_vm0, %v719_v16  ;;  %708 = vmatprep.subr.msk.bf16.mxu1 %vm176_vm0, %v719_v16 }
  0x3b   :  { %660 = vmatpush3.bf16.xpose.msra.mxu0 %v223_v17  ;;  %692 = vmatpush3.bf16.xpose.msra.mxu1 %v223_v17 }
  0x42   :  { %662 = vmatmul.mubr.msk.bf16.vlgmr.msra.gmra.mrb[0].mxu0 %vm176_vm0, %v721_v18  ;;  %670 = vmatmul.mubr.msk.bf16.vlgmr.msra.gmra.mrb[0].mxu1 %vm176_vm0, %v725_v19  ;;  %v68_v18 = vadd.s32 112, %v905_v25 }
  0x43   :  { %665 = vmatprep.mubr.msk.bf16.mxu0 %vm176_vm0, %v722_v20  ;;  %673 = vmatprep.mubr.msk.bf16.mxu1 %vm176_vm0, %v726_v21  ;;  %v69_v21 = vadd.s32 120, %v905_v25 }
  0x44   :  { %vm336_vm15 = vcmp.eq.s32.totalorder %v908_v27, %v68_v18 }
  0x4a   :  { %666 = vmatmul.mubr.msk.bf16.gmra.mrb[4].mxu0 %vm176_vm0, %v723_v22  ;;  %674 = vmatmul.mubr.msk.bf16.gmra.mrb[4].mxu1 %vm176_vm0, %v727_v23  ;;  %vm337_vm0 = vcmp.eq.s32.totalorder %v908_v27, %v69_v21 }
 0x115   :  { %v663_v29 = vpop.f32.mrb[0].mxu0  ;;  %v671_v31 = vpop.f32.mrb[0].mxu1 }
 0x116   :  { %v268_v32 = vadd.f32 %v663_v29, %v913_v28  ;;  %v259_v33 = vpop.f32.mrb[1].mxu0  ;;  %v291_v35 = vpop.f32.mrb[1].mxu1  ;;  %v300_v11 = vadd.f32 %v671_v31, %v913_v28 }
 0x117   :  { %v260_v36 = vadd.f32 %v913_v28, %v259_v33  ;;  %v664_v37 = vpop.f32.mrb[2].mxu0  ;;  %v672_v38 = vpop.f32.mrb[2].mxu1  ;;  %v292_v3 = vadd.f32 %v913_v28, %v291_v35 }
 0x118   :  { %v271_v39 = vadd.f32 %v664_v37, %v913_v28  ;;  %v262_v40 = vpop.f32.mrb[3].mxu0  ;;  %v923_v41 = vsel %vm324_vm1, -1e+30, %v268_v32  ;;  %v294_v42 = vpop.f32.mrb[3].mxu1  ;;  %v303_v14 = vadd.f32 %v672_v38, %v913_v28  ;;  %v984_v16 = vsel %vm332_vm11, -1e+30, %v300_v11 }
 0x119   :  { %v263_v43 = vadd.f32 %v913_v28, %v262_v40  ;;  %358 = vmax.xlane.f32.xlu1 %v923_v41  ;;  %v927_v44 = vsel %vm322_vm2, -1e+30, %v260_v36  ;;  %v295_v5 = vadd.f32 %v913_v28, %v294_v42  ;;  %v968_v8 = vsel %vm330_vm9, -1e+30, %v292_v3 }
 0x11a   :  { %354 = vmax.xlane.f32.xlu0 %v927_v44  ;;  %v933_v46 = vsel %vm325_vm3, -1e+30, %v271_v39  ;;  %v990_v19 = vsel %vm333_vm12, -1e+30, %v303_v14  ;;  %vm546_vm1 = vcmask 7168  }
 0x11b   :  { %v937_v49 = vsel %vm323_vm4, -1e+30, %v263_v43  ;;  %v974_v12 = vsel %vm331_vm10, -1e+30, %v295_v5 }
 0x11d   :  { %360 = vmax.xlane.f32.xlu1 %v933_v46  ;;  %v667_v48 = vpop.f32.mrb[4].mxu0  ;;  %v675_v50 = vpop.f32.mrb[4].mxu1 }
 0x11e   :  { %v275_v51 = vpop.f32.mrb[5].mxu0  ;;  %356 = vmax.xlane.f32.xlu0 %v937_v49  ;;  %v307_v53 = vpop.f32.mrb[5].mxu1  ;;  %v284_v61 = vadd.f32 %v667_v48, %v913_v28  ;;  %v316_v22 = vadd.f32 %v675_v50, %v913_v28 }
 0x11f   :  { %v276_v54 = vadd.f32 %v913_v28, %v275_v51  ;;  %v668_v55 = vpop.f32.mrb[6].mxu0  ;;  %v676_v56 = vpop.f32.mrb[6].mxu1  ;;  %v308_v15 = vadd.f32 %v913_v28, %v307_v53 }
 0x120   :  { %v278_v57 = vpop.f32.mrb[7].mxu0  ;;  %v310_v60 = vpop.f32.mrb[7].mxu1  ;;  %v287_v1 = vadd.f32 %v668_v55, %v913_v28  ;;  %v960_v4 = vsel %vm328_vm7, -1e+30, %v284_v61  ;;  %v319_v24 = vadd.f32 %v676_v56, %v913_v28  ;;  %v1004_v26 = vsel %vm336_vm15, -1e+30, %v316_v22 }
 0x121   :  { %v279_v62 = vadd.f32 %v913_v28, %v278_v57  ;;  %v948_v63 = vsel %vm326_vm5, -1e+30, %v276_v54  ;;  %v311_v17 = vadd.f32 %v913_v28, %v310_v60  ;;  %v992_v20 = vsel %vm334_vm13, -1e+30, %v308_v15 }
 0x122   :  { %362 = vmax.xlane.f32.xlu0 %v948_v63  ;;  %v966_v7 = vsel %vm329_vm8, -1e+30, %v287_v1  ;;  %v1007_v29 = vsel %vm337_vm0, -1e+30, %v319_v24 }
 0x123   :  { %v954_v2 = vsel %vm327_vm6, -1e+30, %v279_v62  ;;  %v997_v23 = vsel %vm335_vm14, -1e+30, %v311_v17 }
 0x124   :  { %364 = vmax.xlane.f32.xlu1 %v954_v2 }
 0x126   :  { %366 = vmax.xlane.f32.xlu0 %v960_v4 }
 0x128   :  { %368 = vmax.xlane.f32.xlu1 %v966_v7 }
 0x12a   :  { %370 = vmax.xlane.f32.xlu0 %v968_v8 }
 0x12c   :  { %372 = vmax.xlane.f32.xlu1 %v974_v12 }
 0x12e   :  { %374 = vmax.xlane.f32.xlu0 %v984_v16 }
 0x130   :  { %376 = vmax.xlane.f32.xlu1 %v990_v19 }
 0x132   :  { %378 = vmax.xlane.f32.xlu0 %v992_v20 }
 0x134   :  { %380 = vmax.xlane.f32.xlu1 %v997_v23 }
 0x136   :  { %382 = vmax.xlane.f32.xlu0 %v1004_v26 }
 0x138   :  { %384 = vmax.xlane.f32.xlu1 %v1007_v29 }
 0x1a6   :  { %v1010_v25 = vpop.xlane.xlu1 %358 }
 0x1a7   :  { %v388_v30 = vsub.f32 %v923_v41, %v1010_v25  ;;  %v1014_v31 = vpop.xlane.xlu0 %354 }
 0x1a8   :  { %v386_v28 = vsub.f32 %v927_v44, %v1014_v31 }
 0x1a9   :  { %v406_v33 = vmul.f32 1.442695, %v388_v30 }
 0x1aa   :  { %v402_v32 = vmul.f32 1.442695, %v386_v28  ;;  %v1018_v27 = vpop.xlane.xlu1 %360 }
 0x1ab   :  { %v389_v34 = vsub.f32 %v933_v46, %v1018_v27  ;;  %v1022_v35 = vpop.xlane.xlu0 %356 }
 0x1ac   :  { %728 = vpow2.f32 %v402_v32  ;;  %v387_v36 = vsub.f32 %v937_v49, %v1022_v35 }
 0x1ad   :  { %730 = vpow2.f32 %v406_v33  ;;  %v408_v38 = vmul.f32 1.442695, %v389_v34 }
 0x1ae   :  { %v404_v37 = vmul.f32 1.442695, %v387_v36 }
 0x1af   :  { %v1026_v39 = vpop.xlane.xlu0 %362 }
 0x1b0   :  { %732 = vpow2.f32 %v404_v37  ;;  %v390_v40 = vsub.f32 %v948_v63, %v1026_v39 }
 0x1b1   :  { %v1030_v41 = vpop.xlane.xlu1 %364  ;;  %734 = vpow2.f32 %v408_v38 }
 0x1b2   :  { %v410_v42 = vmul.f32 1.442695, %v390_v40  ;;  %v391_v43 = vsub.f32 %v954_v2, %v1030_v41 }
 0x1b3   :  { %v1034_v44 = vpop.xlane.xlu0 %366 }
 0x1b4   :  { %736 = vpow2.f32 %v410_v42  ;;  %v412_v45 = vmul.f32 1.442695, %v391_v43  ;;  %v392_v46 = vsub.f32 %v960_v4, %v1034_v44 }
 0x1b5   :  { %v1038_v47 = vpop.xlane.xlu1 %368 }
 0x1b6   :  { %v729_v48 = vpop.eup %728  ;;  %v414_v49 = vmul.f32 1.442695, %v392_v46  ;;  %v393_v50 = vsub.f32 %v966_v7, %v1038_v47  ;;  %738 = vpow2.f32 %v412_v45  ;;  %v514_v45 = vld [vmem:[%s1168_s2] sm:$0xff] }
 0x1b7   :  { %434 = vadd.xlane.f32.xlu0 %v729_v48  ;;  %v1042_v51 = vpop.xlane.xlu0 %370  ;;  %v731_v54 = vpop.eup %730 }
 0x1b8   :  { %740 = vpow2.f32 %v414_v49  ;;  %v416_v52 = vmul.f32 1.442695, %v393_v50  ;;  %v394_v53 = vsub.f32 %v968_v8, %v1042_v51 }
 0x1b9   :  { %v1046_v55 = vpop.xlane.xlu1 %372 }
 0x1ba   :  { %v733_v56 = vpop.eup %732  ;;  %v418_v57 = vmul.f32 1.442695, %v394_v53  ;;  %v395_v58 = vsub.f32 %v974_v12, %v1046_v55  ;;  %742 = vpow2.f32 %v416_v52  ;;  %v515_v52 = vld [vmem:[%s1168_s2 + $0x8] sm:$0xff] }
 0x1bb   :  { %438 = vadd.xlane.f32.xlu0 %v731_v54  ;;  %436 = vadd.xlane.f32.xlu1 %v733_v56  ;;  %v1050_v59 = vpop.xlane.xlu0 %374  ;;  %v735_v62 = vpop.eup %734 }
 0x1bc   :  { %744 = vpow2.f32 %v418_v57  ;;  %v420_v60 = vmul.f32 1.442695, %v395_v58  ;;  %v396_v61 = vsub.f32 %v984_v16, %v1050_v59 }
 0x1bd   :  { %v1054_v63 = vpop.xlane.xlu1 %376 }
 0x1be   :  { %v737_v0 = vpop.eup %736  ;;  %v422_v1 = vmul.f32 1.442695, %v396_v61  ;;  %v397_v2 = vsub.f32 %v990_v19, %v1054_v63  ;;  %746 = vpow2.f32 %v420_v60 }
 0x1bf   :  { %440 = vadd.xlane.f32.xlu1 %v735_v62  ;;  %442 = vadd.xlane.f32.xlu0 %v737_v0  ;;  %v1058_v3 = vpop.xlane.xlu0 %378 }
 0x1c0   :  { %748 = vpow2.f32 %v422_v1  ;;  %v424_v4 = vmul.f32 1.442695, %v397_v2  ;;  %v398_v5 = vsub.f32 %v992_v20, %v1058_v3  ;;  %v739_v6 = vpop.eup %738 }
 0x1c1   :  { %v1062_v7 = vpop.xlane.xlu1 %380 }
 0x1c2   :  { %v741_v8 = vpop.eup %740  ;;  %v426_v9 = vmul.f32 1.442695, %v398_v5  ;;  %v399_v10 = vsub.f32 %v997_v23, %v1062_v7  ;;  %750 = vpow2.f32 %v424_v4  ;;  %v517_v4 = vld [vmem:[%s1168_s2 + $0x18] sm:$0xff] }
 0x1c3   :  { %444 = vadd.xlane.f32.xlu1 %v739_v6  ;;  %446 = vadd.xlane.f32.xlu0 %v741_v8  ;;  %v1066_v11 = vpop.xlane.xlu0 %382 }
 0x1c4   :  { %752 = vpow2.f32 %v426_v9  ;;  %v428_v12 = vmul.f32 1.442695, %v399_v10  ;;  %v400_v13 = vsub.f32 %v1004_v26, %v1066_v11  ;;  %v743_v14 = vpop.eup %742 }
 0x1c5   :  { %v1070_v15 = vpop.xlane.xlu1 %384 }
 0x1c6   :  { %v745_v16 = vpop.eup %744  ;;  %v430_v17 = vmul.f32 1.442695, %v400_v13  ;;  %v401_v18 = vsub.f32 %v1007_v29, %v1070_v15  ;;  %754 = vpow2.f32 %v428_v12 }
 0x1c7   :  { %448 = vadd.xlane.f32.xlu1 %v743_v14  ;;  %450 = vadd.xlane.f32.xlu0 %v745_v16 }
 0x1c8   :  { %756 = vpow2.f32 %v430_v17  ;;  %v432_v19 = vmul.f32 1.442695, %v401_v18  ;;  %v747_v20 = vpop.eup %746 }
 0x1ca   :  { %v749_v21 = vpop.eup %748  ;;  %758 = vpow2.f32 %v432_v19 }
 0x1cb   :  { %452 = vadd.xlane.f32.xlu1 %v747_v20  ;;  %454 = vadd.xlane.f32.xlu0 %v749_v21 }
 0x1cc   :  { %v751_v22 = vpop.eup %750 }
 0x1ce   :  { %v753_v23 = vpop.eup %752 }
 0x1cf   :  { %456 = vadd.xlane.f32.xlu1 %v751_v22  ;;  %458 = vadd.xlane.f32.xlu0 %v753_v23 }
 0x1d0   :  { %v755_v24 = vpop.eup %754 }
 0x1d2   :  { %v757_v26 = vpop.eup %756 }
 0x1d3   :  { %460 = vadd.xlane.f32.xlu1 %v755_v24  ;;  %462 = vadd.xlane.f32.xlu0 %v757_v26 }
 0x1d4   :  { %v759_v30 = vpop.eup %758 }
 0x1d7   :  { %464 = vadd.xlane.f32.xlu1 %v759_v30 }
 0x244   :  { %v435_v29 = vpop.xlane.xlu0 %434 }
 0x245   :  { %760 = vlog2.f32 %v435_v29 }
 0x248   :  { %v437_v28 = vpop.xlane.xlu1 %436  ;;  %v439_v32 = vpop.xlane.xlu0 %438 }
 0x249   :  { %762 = vlog2.f32 %v437_v28 }
 0x24a   :  { %764 = vlog2.f32 %v439_v32 }
 0x24c   :  { %v441_v33 = vpop.xlane.xlu1 %440  ;;  %v443_v34 = vpop.xlane.xlu0 %442 }
 0x24d   :  { %766 = vlog2.f32 %v441_v33 }
 0x24e   :  { %768 = vlog2.f32 %v443_v34 }
 0x24f   :  { %v761_v36 = vpop.eup %760 }
 0x250   :  { %v467_v37 = vmul.f32 0.6931472, %v761_v36  ;;  %v445_v38 = vpop.xlane.xlu1 %444  ;;  %v447_v40 = vpop.xlane.xlu0 %446 }
 0x251   :  { %770 = vlog2.f32 %v445_v38 }
 0x252   :  { %v498_v42 = vadd.f32 %v467_v37, %v1014_v31  ;;  %772 = vlog2.f32 %v447_v40  ;;  %v516_v31 = vld [vmem:[%s1168_s2 + $0x10] sm:$0xff] }
 0x253   :  { %v763_v43 = vpop.eup %762 }
 0x254   :  { %v765_v46 = vpop.eup %764  ;;  %v469_v48 = vmul.f32 0.6931472, %v763_v43  ;;  %v449_v49 = vpop.xlane.xlu1 %448  ;;  %v530_v54 = vmul.f32 %v514_v45, %v498_v42 }
 0x255   :  { %v451_v50 = vpop.xlane.xlu0 %450  ;;  %v471_v53 = vmul.f32 0.6931472, %v765_v46  ;;  %774 = vlog2.f32 %v449_v49 }
 0x256   :  { %v499_v56 = vadd.f32 %v469_v48, %v1022_v35  ;;  %776 = vlog2.f32 %v451_v50  ;;  %v547_v5 = vsel %vm546_vm1, %v530_v54, 0.0 }
 0x257   :  { %v767_v57 = vpop.eup %766  ;;  %v500_v58 = vadd.f32 %v471_v53, %v1010_v25  ;;  %v518_v25 = vld [vmem:[%s1168_s2 + $0x20] sm:$0xff] }
 0x258   :  { %v769_v60 = vpop.eup %768  ;;  %v531_v61 = vmul.f32 %v515_v52, %v499_v56  ;;  %v473_v62 = vmul.f32 0.6931472, %v767_v57  ;;  %v453_v0 = vpop.xlane.xlu1 %452 }
 0x259   :  { %v455_v1 = vpop.xlane.xlu0 %454  ;;  %v532_v2 = vmul.f32 %v516_v31, %v500_v58  ;;  %v475_v35 = vmul.f32 0.6931472, %v769_v60  ;;  %778 = vlog2.f32 %v453_v0 }
 0x25a   :  { %v548_v6 = vsel %vm546_vm1, %v531_v61, 0.0  ;;  %v501_v8 = vadd.f32 %v473_v62, %v1018_v27  ;;  %780 = vlog2.f32 %v455_v1  ;;  %v519_v27 = vld [vmem:[%s1168_s2 + $0x28] sm:$0xff] }
 0x25b   :  { %v771_v9 = vpop.eup %770  ;;  %v549_v10 = vadd.f32 %v548_v6, %v547_v5  ;;  %v502_v12 = vadd.f32 %v475_v35, %v1026_v39  ;;  %v550_v14 = vsel %vm546_vm1, %v532_v2, 0.0  ;;  %v520_v39 = vld [vmem:[%s1168_s2 + $0x30] sm:$0xff] }
 0x25c   :  { %v773_v13 = vpop.eup %772  ;;  %v533_v16 = vmul.f32 %v517_v4, %v501_v8  ;;  %v477_v17 = vmul.f32 0.6931472, %v771_v9  ;;  %v457_v18 = vpop.xlane.xlu1 %456 }
 0x25d   :  { %v459_v19 = vpop.xlane.xlu0 %458  ;;  %v551_v20 = vadd.f32 %v550_v14, %v549_v10  ;;  %v534_v21 = vmul.f32 %v518_v25, %v502_v12  ;;  %v479_v22 = vmul.f32 0.6931472, %v773_v13  ;;  %782 = vlog2.f32 %v457_v18  ;;  %v525_v25 = vld [vmem:[%s1168_s2 + $0x58] sm:$0xff] }
 0x25e   :  { %v552_v23 = vsel %vm546_vm1, %v533_v16, 0.0  ;;  %v503_v24 = vadd.f32 %v477_v17, %v1030_v41  ;;  %784 = vlog2.f32 %v459_v19  ;;  %v521_v41 = vld [vmem:[%s1168_s2 + $0x38] sm:$0xff] }
 0x25f   :  { %v775_v26 = vpop.eup %774  ;;  %v553_v30 = vadd.f32 %v552_v23, %v551_v20  ;;  %v504_v29 = vadd.f32 %v479_v22, %v1034_v44  ;;  %v554_v32 = vsel %vm546_vm1, %v534_v21, 0.0  ;;  %v522_v44 = vld [vmem:[%s1168_s2 + $0x40] sm:$0xff] }
 0x260   :  { %v777_v28 = vpop.eup %776  ;;  %v535_v33 = vmul.f32 %v519_v27, %v503_v24  ;;  %v481_v34 = vmul.f32 0.6931472, %v775_v26  ;;  %v461_v36 = vpop.xlane.xlu1 %460  ;;  %v527_v27 = vld [vmem:[%s1168_s2 + $0x68] sm:$0xff] }
 0x261   :  { %v463_v37 = vpop.xlane.xlu0 %462  ;;  %v555_v38 = vadd.f32 %v554_v32, %v553_v30  ;;  %v536_v40 = vmul.f32 %v520_v39, %v504_v29  ;;  %v483_v42 = vmul.f32 0.6931472, %v777_v28  ;;  %786 = vlog2.f32 %v461_v36  ;;  %v529_v32 = vld [vmem:[%s1168_s2 + $0x78] sm:$0xff] }
 0x262   :  { %v556_v43 = vsel %vm546_vm1, %v535_v33, 0.0  ;;  %v505_v45 = vadd.f32 %v481_v34, %v1038_v47  ;;  %788 = vlog2.f32 %v463_v37  ;;  %v523_v47 = vld [vmem:[%s1168_s2 + $0x48] sm:$0xff] }
 0x263   :  { %v779_v46 = vpop.eup %778  ;;  %v557_v48 = vadd.f32 %v556_v43, %v555_v38  ;;  %v506_v49 = vadd.f32 %v483_v42, %v1042_v51  ;;  %v558_v52 = vsel %vm546_vm1, %v536_v40, 0.0  ;;  %v524_v51 = vld [vmem:[%s1168_s2 + $0x50] sm:$0xff] }
 0x264   :  { %v781_v50 = vpop.eup %780  ;;  %v537_v53 = vmul.f32 %v521_v41, %v505_v45  ;;  %v485_v54 = vmul.f32 0.6931472, %v779_v46  ;;  %v465_v56 = vpop.xlane.xlu1 %464 }
 0x265   :  { %v559_v31 = vadd.f32 %v558_v52, %v557_v48  ;;  %v538_v57 = vmul.f32 %v522_v44, %v506_v49  ;;  %v487_v58 = vmul.f32 0.6931472, %v781_v50  ;;  %790 = vlog2.f32 %v465_v56 }
 0x266   :  { %v560_v60 = vsel %vm546_vm1, %v537_v53, 0.0  ;;  %v507_v61 = vadd.f32 %v485_v54, %v1046_v55 }
 0x267   :  { %v783_v62 = vpop.eup %782  ;;  %v561_v0 = vadd.f32 %v560_v60, %v559_v31  ;;  %v508_v1 = vadd.f32 %v487_v58, %v1050_v59  ;;  %v562_v4 = vsel %vm546_vm1, %v538_v57, 0.0  ;;  %v526_v59 = vld [vmem:[%s1168_s2 + $0x60] sm:$0xff] }
 0x268   :  { %v785_v2 = vpop.eup %784  ;;  %v539_v35 = vmul.f32 %v523_v47, %v507_v61  ;;  %v489_v5 = vmul.f32 0.6931472, %v783_v62 }
 0x269   :  { %v563_v6 = vadd.f32 %v562_v4, %v561_v0  ;;  %v540_v8 = vmul.f32 %v524_v51, %v508_v1  ;;  %v491_v55 = vmul.f32 0.6931472, %v785_v2 }
 0x26a   :  { %v564_v9 = vsel %vm546_vm1, %v539_v35, 0.0  ;;  %v509_v10 = vadd.f32 %v489_v5, %v1054_v63 }
 0x26b   :  { %v787_v12 = vpop.eup %786  ;;  %v565_v13 = vadd.f32 %v564_v9, %v563_v6  ;;  %v510_v14 = vadd.f32 %v491_v55, %v1058_v3  ;;  %v566_v17 = vsel %vm546_vm1, %v540_v8, 0.0  ;;  %v528_v3 = vld [vmem:[%s1168_s2 + $0x70] sm:$0xff] }
 0x26c   :  { %v789_v16 = vpop.eup %788  ;;  %v541_v18 = vmul.f32 %v525_v25, %v509_v10  ;;  %v493_v19 = vmul.f32 0.6931472, %v787_v12 }
 0x26d   :  { %v567_v20 = vadd.f32 %v566_v17, %v565_v13  ;;  %v542_v21 = vmul.f32 %v526_v59, %v510_v14  ;;  %v495_v63 = vmul.f32 0.6931472, %v789_v16 }
 0x26e   :  { %v568_v22 = vsel %vm546_vm1, %v541_v18, 0.0  ;;  %v511_v23 = vadd.f32 %v493_v19, %v1062_v7 }
 0x26f   :  { %v791_v24 = vpop.eup %790  ;;  %v512_v39 = vadd.f32 %v495_v63, %v1066_v11  ;;  %v569_v26 = vadd.f32 %v568_v22, %v567_v20  ;;  %v570_v28 = vsel %vm546_vm1, %v542_v21, 0.0 }
 0x270   :  { %v543_v30 = vmul.f32 %v527_v27, %v511_v23  ;;  %v497_v29 = vmul.f32 0.6931472, %v791_v24 }
 0x271   :  { %v544_v33 = vmul.f32 %v528_v3, %v512_v39  ;;  %v571_v34 = vadd.f32 %v570_v28, %v569_v26 }
 0x272   :  { %v513_v7 = vadd.f32 %v497_v29, %v1070_v15  ;;  %v572_v36 = vsel %vm546_vm1, %v543_v30, 0.0 }
 0x273   :  { %v573_v37 = vadd.f32 %v572_v36, %v571_v34  ;;  %v574_v40 = vsel %vm546_vm1, %v544_v33, 0.0 }
 0x274   :  { %v545_v38 = vmul.f32 %v529_v32, %v513_v7 }
 0x275   :  { %v575_v11 = vadd.f32 %v574_v40, %v573_v37 }
 0x276   :  { %v576_v41 = vsel %vm546_vm1, %v545_v38, 0.0 }
 0x277   :  { %v577_v42 = vadd.f32 %v576_v41, %v575_v11 }
 0x279   :  { %578 = vadd.xlane.f32.xlu0 %v577_v42 }
 0x306   :  { %v579_v43 = vpop.xlane.xlu0 %578 }
 0x307   :  { %v580_v45 = vrot.slane %v579_v43, 4 }
 0x309   :  { %v581_v44 = vadd.f32 %v580_v45, %v579_v43 }
 0x30b   :  { %v582_v46 = vrot.slane %v581_v44, 2 }
 0x30d   :  { %v583_v48 = vadd.f32 %v582_v46, %v581_v44 }
 0x30f   :  { %v584_v49 = vrot.slane %v583_v48, 1 }
 0x311   :  { %v585_v50 = vadd.f32 %v584_v49, %v583_v48 }
 0x313   :  { %709 = vpush %v585_v50 }
 0x344   :  { %s710_s2 = spop %709 }
 0x345   :  { %588 = sst [smem:[#allocation2]] %s710_s2 }
 0x346   :  { %801 = shalt.err (!%p798_p2)
}
 0x347   :  { %s804_s27 = smov [#allocation2]  }
 0x348   :  { %596 = dma.smem_to_hbm %s804_s27, 16, %s1169_s3, [#allocation3]  }
 0x349   :  { %802 = dma.done.wait [#allocation3], 16  }
 0x34a   :  { %803 = vsyncadd [#allocation3], 4294967280 }
 0x34b   :  { %600 = sfence }
 0x34c   :  { %601 = vsyncpa [#allocation3], 1 }

</bundles_post_ra>
